<compile_context>
chip_gen: v6e
topology: v6e:2x2x1
jax: 0.10.0
libtpu: 0.0.40
codegen_flags: <defaults>
</compile_context>

<pallas_src>
import functools
import math

import jax
import jax.numpy as jnp
from jax.experimental import pallas as pl
from jax.experimental.pallas import tpu as pltpu

_INV_SQRT2 = 1.0 / math.sqrt(2.0)


def _round_up(x, m):
    return ((x + m - 1) // m) * m


def _gelu(h, approximate):
    if approximate:
        # tanh-approximate GELU: the transcendental goes to the EUP slot,
        # keeping the VALU free once the kernel is MXU-bound.
        return jax.nn.gelu(h, approximate=True)
    # exact erf GELU -- matches PyTorch's default nn.GELU()
    return 0.5 * h * (1.0 + jax.lax.erf(h * _INV_SQRT2))


# ---------------------------------------------------------------------------
# Kernels
# ---------------------------------------------------------------------------
def _mlp_kernel_resident(x_ref, w1_ref, b1_ref, w2_ref, b2_ref, o_ref, *, approximate):
    """Full fc1/fc2 weights resident in VMEM; 1-D grid over row tiles."""
    x = x_ref[...].astype(jnp.bfloat16)                       # cast in-kernel
    h = jnp.dot(x, w1_ref[...], preferred_element_type=jnp.float32) + b1_ref[...]
    h = _gelu(h, approximate)
    o_ref[...] = (jnp.dot(h.astype(jnp.bfloat16), w2_ref[...],
                          preferred_element_type=jnp.float32)
                  + b2_ref[...]).astype(o_ref.dtype)


def _mlp_kernel_htiled(x_ref, w1_ref, b1_ref, w2_ref, b2_ref, o_ref, acc_ref, *,
                       approximate):
    """Hidden dim streamed in chunks; f32 accumulator resident across the j axis."""
    j = pl.program_id(1)

    @pl.when(j == 0)
    def _init():
        acc_ref[...] = jnp.zeros_like(acc_ref)

    x = x_ref[...].astype(jnp.bfloat16)
    h = jnp.dot(x, w1_ref[...], preferred_element_type=jnp.float32) + b1_ref[...]
    h = _gelu(h, approximate)
    acc_ref[...] += jnp.dot(h.astype(jnp.bfloat16), w2_ref[...],
                            preferred_element_type=jnp.float32)

    @pl.when(j == pl.num_programs(1) - 1)
    def _finalize():
        o_ref[...] = (acc_ref[...] + b2_ref[...]).astype(o_ref.dtype)


# ---------------------------------------------------------------------------
# VMEM budgeting
# ---------------------------------------------------------------------------
def _vmem_budget_bytes():
    try:
        cap = pltpu.get_tpu_info().vmem_capacity_bytes
    except Exception:
        cap = 64 * 1024 * 1024          # conservative: assume a v7x-sized VMEM
    return int(cap) * 3 // 4            # leave 25% headroom


def _resident_footprint(tm, c_in_p, h_p, c_out_p, x_bytes, o_bytes):
    return (2 * tm * c_in_p * x_bytes       # x double buffer
            + 2 * c_in_p * h_p * 2          # fc1 weights (bf16, budget 2 bufs)
            + 2 * h_p * c_out_p * 2         # fc2 weights
            + 2 * tm * c_out_p * o_bytes    # out double buffer
            + tm * h_p * 6                  # f32 hidden temp + bf16 copy
            + tm * c_out_p * 4              # f32 fc2 result before cast
            + 4 * (h_p + c_out_p))          # biases


def _htiled_footprint(tm, th, c_in_p, c_out_p, x_bytes, o_bytes):
    return (2 * tm * c_in_p * x_bytes
            + 2 * c_in_p * th * 2
            + 2 * th * c_out_p * 2
            + 2 * tm * c_out_p * o_bytes
            + tm * c_out_p * 4              # acc scratch
            + tm * th * 6                   # f32 hidden chunk temp + bf16 copy
            + 4 * (th + c_out_p))


# ---------------------------------------------------------------------------
# Parameter preparation (one-time pad + cast; removed from the per-call path)
# ---------------------------------------------------------------------------
def prepare_mlp_params(w1, b1, w2, b2):
    """Pad the big weight matrices to lane-dense multiples of 128 and cast to
    bf16 once.  Biases stay un-padded f32 so the original H / C_out remain
    recoverable from their shapes.  Weights are (in, out): kernel does x@W+b."""
    C_in, H = w1.shape
    C_out = w2.shape[1]
    C_in_p, H_p, C_out_p = (_round_up(d, 128) for d in (C_in, H, C_out))
    w1_p = jnp.pad(w1, ((0, C_in_p - C_in), (0, H_p - H))).astype(jnp.bfloat16)
    w2_p = jnp.pad(w2, ((0, H_p - H), (0, C_out_p - C_out))).astype(jnp.bfloat16)
    return w1_p, b1.astype(jnp.float32), w2_p, b2.astype(jnp.float32)


# ---------------------------------------------------------------------------
# Forward
# ---------------------------------------------------------------------------
@functools.partial(jax.jit,
                   static_argnames=("tm", "th", "approximate_gelu", "out_dtype"))
def mlp_forward(x, w1_p, b1, w2_p, b2, *, tm=512, th=1024,
                approximate_gelu=True, out_dtype=None):
    """x: (B, N, C_in) -> (B, N, C_out).  fc1 -> GELU -> fc2 runs in Pallas.

    w1_p / w2_p must come from `prepare_mlp_params` (padded, bf16)."""
    B, N, C_in = x.shape
    C_in_p, H_p = w1_p.shape
    C_out_p = w2_p.shape[1]
    H = b1.shape[0]
    C_out = b2.shape[0]
    M = B * N
    out_dtype = x.dtype if out_dtype is None else out_dtype
    x_bytes = jnp.dtype(x.dtype).itemsize
    o_bytes = jnp.dtype(out_dtype).itemsize

    # --- row tiling -------------------------------------------------------
    rows8 = _round_up(M, 8)
    tm_eff = min(_round_up(tm, 8), rows8)
    # Keep >= 2 row tiles when there are enough rows so v7x's second
    # TensorCore is not left idle by the "parallel" row axis.
    if tm_eff == rows8 and M > 512:
        tm_eff = _round_up((M + 1) // 2, 8)
    M_p = _round_up(M, tm_eff)

    # --- input padding (skipped when already 8/128-aligned) ----------------
    x2d = x.reshape(M, C_in)
    if (M_p, C_in_p) != (M, C_in):
        x2d = jnp.pad(x2d, ((0, M_p - M), (0, C_in_p - C_in)))

    b1_p = jnp.pad(b1, (0, H_p - H)).astype(jnp.float32).reshape(1, H_p)
    b2_p = jnp.pad(b2, (0, C_out_p - C_out)).astype(jnp.float32).reshape(1, C_out_p)

    budget = _vmem_budget_bytes()
    use_resident = (
        _resident_footprint(tm_eff, C_in_p, H_p, C_out_p, x_bytes, o_bytes) <= budget)

    if use_resident:
        out_p = pl.pallas_call(
            functools.partial(_mlp_kernel_resident, approximate=approximate_gelu),
            out_shape=jax.ShapeDtypeStruct((M_p, C_out_p), out_dtype),
            grid_spec=pltpu.PrefetchScalarGridSpec(
                num_scalar_prefetch=0,
                grid=(M_p // tm_eff,),
                in_specs=[
                    pl.BlockSpec((tm_eff, C_in_p), lambda i: (i, 0)),   # x row tile
                    pl.BlockSpec((C_in_p, H_p), lambda i: (0, 0)),      # fc1 W (resident)
                    pl.BlockSpec((1, H_p), lambda i: (0, 0)),           # fc1 b
                    pl.BlockSpec((H_p, C_out_p), lambda i: (0, 0)),     # fc2 W (resident)
                    pl.BlockSpec((1, C_out_p), lambda i: (0, 0)),       # fc2 b
                ],
                out_specs=pl.BlockSpec((tm_eff, C_out_p), lambda i: (i, 0)),
            ),
            compiler_params=pltpu.CompilerParams(
                dimension_semantics=("parallel",),
                vmem_limit_bytes=budget,
            ),
        )(x2d, w1_p, b1_p, w2_p, b2_p)
    else:
        # Fallback for very large hidden dims: stream H in the largest chunk
        # (multiple of 128, divides H_p) that fits the VMEM budget.
        th_eff = 128
        cand = min(_round_up(th, 128), H_p)
        while cand >= 128:
            if (H_p % cand == 0 and
                    _htiled_footprint(tm_eff, cand, C_in_p, C_out_p,
                                      x_bytes, o_bytes) <= budget):
                th_eff = cand
                break
            cand -= 128

        out_p = pl.pallas_call(
            functools.partial(_mlp_kernel_htiled, approximate=approximate_gelu),
            out_shape=jax.ShapeDtypeStruct((M_p, C_out_p), out_dtype),
            grid_spec=pltpu.PrefetchScalarGridSpec(
                num_scalar_prefetch=0,
                grid=(M_p // tm_eff, H_p // th_eff),
                in_specs=[
                    pl.BlockSpec((tm_eff, C_in_p), lambda i, j: (i, 0)),   # x row tile
                    pl.BlockSpec((C_in_p, th_eff), lambda i, j: (0, j)),   # fc1 W chunk
                    pl.BlockSpec((1, th_eff), lambda i, j: (0, j)),        # fc1 b chunk
                    pl.BlockSpec((th_eff, C_out_p), lambda i, j: (j, 0)),  # fc2 W chunk
                    pl.BlockSpec((1, C_out_p), lambda i, j: (0, 0)),       # fc2 b
                ],
                out_specs=pl.BlockSpec((tm_eff, C_out_p), lambda i, j: (i, 0)),
                scratch_shapes=[pltpu.VMEM((tm_eff, C_out_p), jnp.float32)],
            ),
            compiler_params=pltpu.CompilerParams(
                dimension_semantics=("parallel", "arbitrary"),
                vmem_limit_bytes=budget,
            ),
        )(x2d, w1_p, b1_p, w2_p, b2_p)

    return out_p[:M, :C_out].reshape(B, N, C_out)


def init_mlp_params(key, in_features, hidden_features, out_features, dtype=jnp.float32):
    """Weights stored as (in, out) so the kernel computes x @ W + b."""
    k1, k2, k3, k4 = jax.random.split(key, 4)
    lim1 = 1.0 / math.sqrt(in_features)
    lim2 = 1.0 / math.sqrt(hidden_features)
    w1 = jax.random.uniform(k1, (in_features, hidden_features), dtype, -lim1, lim1)
    b1 = jax.random.uniform(k2, (hidden_features,), dtype, -lim1, lim1)
    w2 = jax.random.uniform(k3, (hidden_features, out_features), dtype, -lim2, lim2)
    b2 = jax.random.uniform(k4, (out_features,), dtype, -lim2, lim2)
    return w1, b1, w2, b2


if __name__ == "__main__":
    key = jax.random.PRNGKey(0)
    k_x, k_p = jax.random.split(key)

    B, N = 2, 8              # batch, sequence length
    in_features = 32
    hidden_features = 64
    out_features = 32

    x = jax.random.normal(k_x, (B, N, in_features), jnp.float32)
    w1, b1, w2, b2 = init_mlp_params(k_p, in_features, hidden_features, out_features)
    w1_p, b1_f, w2_p, b2_f = prepare_mlp_params(w1, b1, w2, b2)

    out = mlp_forward(x, w1_p, b1_f, w2_p, b2_f)
    out = jax.block_until_ready(out)

    # f32 reference in plain JAX (exact erf GELU, matching nn.GELU(); dropout
    # p=0 is identity).  The kernel feeds the MXU bf16 operands and uses the
    # tanh-approximate GELU, so tolerance is relaxed vs pure f32.
    # TODO(synk): set approximate_gelu=False if bit-faithful erf GELU is required.
    h_ref = x.reshape(-1, in_features) @ w1 + b1
    h_ref = 0.5 * h_ref * (1.0 + jax.lax.erf(h_ref / math.sqrt(2.0)))
    o_ref = (h_ref @ w2 + b2).reshape(B, N, out_features)
    assert jnp.allclose(out, o_ref, atol=3e-2, rtol=3e-2), "mismatch vs reference"

    print("KERNEL_OK")
</pallas_src>

<mosaic_0001>
module attributes {stable_mosaic.version = 11 : i64} {
  func.func @_mlp_kernel_resident(%arg0: i32, %arg1: memref<16x128xf32, #tpu.memory_space<vmem>>, %arg2: memref<128x128xbf16, #tpu.memory_space<vmem>>, %arg3: memref<1x128xf32, #tpu.memory_space<vmem>>, %arg4: memref<128x128xbf16, #tpu.memory_space<vmem>>, %arg5: memref<1x128xf32, #tpu.memory_space<vmem>>, %arg6: memref<16x128xf32, #tpu.memory_space<vmem>>) attributes {dimension_semantics = [#tpu.dimension_semantics<parallel>], iteration_bounds = array<i64: 1>, scalar_prefetch = 0 : i64, scratch_operands = 0 : i64, tpu.core_type = #tpu.core_type<tc>, window_params = [{transform_indices = @transform_0, window_bounds = array<i64: 16, 128>}, {pipeline_mode = #tpu.pipeline_mode<synchronous>, transform_indices = @transform_1, window_bounds = array<i64: 128, 128>}, {pipeline_mode = #tpu.pipeline_mode<synchronous>, transform_indices = @transform_2, window_bounds = array<i64: 1, 128>}, {pipeline_mode = #tpu.pipeline_mode<synchronous>, transform_indices = @transform_3, window_bounds = array<i64: 128, 128>}, {pipeline_mode = #tpu.pipeline_mode<synchronous>, transform_indices = @transform_4, window_bounds = array<i64: 1, 128>}, {transform_indices = @transform_5, window_bounds = array<i64: 16, 128>}]} {
    %c0 = arith.constant 0 : index
    %c0_0 = arith.constant 0 : index
    %0 = vector.load %arg1[%c0, %c0_0] : memref<16x128xf32, #tpu.memory_space<vmem>>, vector<16x128xf32>
    %1 = arith.truncf %0 : vector<16x128xf32> to vector<16x128xbf16>
    %c0_1 = arith.constant 0 : index
    %c0_2 = arith.constant 0 : index
    %2 = vector.load %arg2[%c0_1, %c0_2] : memref<128x128xbf16, #tpu.memory_space<vmem>>, vector<128x128xbf16>
    %cst = arith.constant dense<0.000000e+00> : vector<16x128xf32>
    %3 = tpu.matmul %1, %2, %cst {dimension_numbers = #tpu.dot_dimension_numbers<[1], [0], [0], [1], [0, 0, 1, 1], [], []>} : vector<16x128xbf16>, vector<128x128xbf16>, vector<16x128xf32> -> vector<16x128xf32>
    %c0_3 = arith.constant 0 : index
    %c0_4 = arith.constant 0 : index
    %4 = vector.load %arg3[%c0_3, %c0_4] : memref<1x128xf32, #tpu.memory_space<vmem>>, vector<1x128xf32>
    %5 = vector.broadcast %4 : vector<1x128xf32> to vector<16x128xf32>
    %6 = arith.addf %3, %5 : vector<16x128xf32>
    %7 = arith.mulf %6, %6 : vector<16x128xf32>
    %8 = arith.mulf %6, %7 : vector<16x128xf32>
    %cst_5 = arith.constant 4.471500e-02 : f32
    %9 = vector.broadcast %cst_5 : f32 to vector<16x128xf32>
    %10 = arith.mulf %9, %8 : vector<16x128xf32>
    %11 = arith.addf %6, %10 : vector<16x128xf32>
    %cst_6 = arith.constant 0.797884583 : f32
    %12 = vector.broadcast %cst_6 : f32 to vector<16x128xf32>
    %13 = arith.mulf %12, %11 : vector<16x128xf32>
    %14 = math.tanh %13 : vector<16x128xf32>
    %cst_7 = arith.constant 1.000000e+00 : f32
    %15 = vector.broadcast %cst_7 : f32 to vector<16x128xf32>
    %16 = arith.addf %15, %14 : vector<16x128xf32>
    %cst_8 = arith.constant 5.000000e-01 : f32
    %17 = vector.broadcast %cst_8 : f32 to vector<16x128xf32>
    %18 = arith.mulf %17, %16 : vector<16x128xf32>
    %19 = arith.mulf %6, %18 : vector<16x128xf32>
    %20 = arith.truncf %19 : vector<16x128xf32> to vector<16x128xbf16>
    %c0_9 = arith.constant 0 : index
    %c0_10 = arith.constant 0 : index
    %21 = vector.load %arg4[%c0_9, %c0_10] : memref<128x128xbf16, #tpu.memory_space<vmem>>, vector<128x128xbf16>
    %cst_11 = arith.constant dense<0.000000e+00> : vector<16x128xf32>
    %22 = tpu.matmul %20, %21, %cst_11 {dimension_numbers = #tpu.dot_dimension_numbers<[1], [0], [0], [1], [0, 0, 1, 1], [], []>} : vector<16x128xbf16>, vector<128x128xbf16>, vector<16x128xf32> -> vector<16x128xf32>
    %c0_12 = arith.constant 0 : index
    %c0_13 = arith.constant 0 : index
    %23 = vector.load %arg5[%c0_12, %c0_13] : memref<1x128xf32, #tpu.memory_space<vmem>>, vector<1x128xf32>
    %24 = vector.broadcast %23 : vector<1x128xf32> to vector<16x128xf32>
    %25 = arith.addf %22, %24 : vector<16x128xf32>
    %c0_14 = arith.constant 0 : index
    %c0_15 = arith.constant 0 : index
    %26 = vector.load %arg6[%c0_14, %c0_15] : memref<16x128xf32, #tpu.memory_space<vmem>>, vector<16x128xf32>
    tpu.vector_store %arg6[%c0_14, %c0_15], %25 {strides = array<i32>} : memref<16x128xf32, #tpu.memory_space<vmem>>, vector<16x128xf32>,
    return
  }
  func.func @transform_0(%arg0: i32) -> (i32, i32) {
    %c0_i32 = arith.constant 0 : i32
    %c0_i32_0 = arith.constant 0 : i32
    return %arg0, %c0_i32 : i32, i32
  }
  func.func @transform_1(%arg0: i32) -> (i32, i32) {
    %c0_i32 = arith.constant 0 : i32
    %c0_i32_0 = arith.constant 0 : i32
    %c0_i32_1 = arith.constant 0 : i32
    return %c0_i32, %c0_i32_0 : i32, i32
  }
  func.func @transform_2(%arg0: i32) -> (i32, i32) {
    %c0_i32 = arith.constant 0 : i32
    %c0_i32_0 = arith.constant 0 : i32
    %c0_i32_1 = arith.constant 0 : i32
    return %c0_i32, %c0_i32_0 : i32, i32
  }
  func.func @transform_3(%arg0: i32) -> (i32, i32) {
    %c0_i32 = arith.constant 0 : i32
    %c0_i32_0 = arith.constant 0 : i32
    %c0_i32_1 = arith.constant 0 : i32
    return %c0_i32, %c0_i32_0 : i32, i32
  }
  func.func @transform_4(%arg0: i32) -> (i32, i32) {
    %c0_i32 = arith.constant 0 : i32
    %c0_i32_0 = arith.constant 0 : i32
    %c0_i32_1 = arith.constant 0 : i32
    return %c0_i32, %c0_i32_0 : i32, i32
  }
  func.func @transform_5(%arg0: i32) -> (i32, i32) {
    %c0_i32 = arith.constant 0 : i32
    %c0_i32_0 = arith.constant 0 : i32
    return %arg0, %c0_i32 : i32, i32
  }
}

</mosaic_0001>

<bundles_post_ra>
// kernel: mlp_forward.1
= control target key start
LH: loop header
LB: loop body
LE: loop exit
PB: predicated region body
PF: predicated region fallthrough
CT: control target
= control target key end

     0   :  { %10 = vsyncpa [#allocation3], 0  ;;  %s509_s0 = inlined_call_operand.vmem [shape: f32[16,128], index: 0, kind: input, shape index: {}]   ;;  %s510_s1 = inlined_call_operand.hbm [shape: bf16[128,128], index: 1, kind: input, shape index: {}]   ;;  %s511_s2 = inlined_call_operand.vmem [shape: f32[1,128], index: 2, kind: input, shape index: {}]   ;;  %s512_s3 = inlined_call_operand.hbm [shape: bf16[128,128], index: 3, kind: input, shape index: {}]   ;;  %s513_s4 = inlined_call_operand.vmem [shape: f32[1,128], index: 4, kind: input, shape index: {}]   ;;  %s514_s5 = inlined_call_operand.vmem [shape: f32[16,128], index: 5, kind: output, shape index: {}]  }
   0x1   :  { %11 = vsyncpa [#allocation5], 0  ;;  %s449_s18 = smov [#allocation2]  }
   0x2   :  { %s19_s19 = sshll.u32 %s449_s18, 4  ;;  %s20_s19 = int_to_ptr.vmem [resolvable:$true] %s19_s19 }
   0x3   :  { %s413_s20 = scalar_lea.vmem %s20_s19, 1024  ;;  %p418_p1 = scmp.lt.s32.totalorder %s20_s19, %s20_s19 }
   0x4   :  { %p414_p0 = scmp.ne.s32.totalorder %s20_s19, %s413_s20  ;;  %p419_p2 = scmp.lt.s32.totalorder %s413_s20, %s413_s20 }
   0x6   :  { %p420_p3 = por %p419_p2, %p418_p1 }
   0x8   :  { %p421_p4 = pnand %p420_p3, %p414_p0 }
   0xa   :  { %424 = shalt.err (!%p421_p4)
}
   0xb   :  { %s450_s21 = smov 64   ;;  %s451_s22 = smov 4  }
   0xc   :  { %25 = dma.hbm_to_vmem [thread:$0]  %s510_s1, 1024, %s20_s19, [#allocation3], %s450_s21, %s450_s21, %s451_s22  }
   0xd   :  { %s452_s25 = smov [#allocation4]  }
   0xe   :  { %s33_s26 = sshll.u32 %s452_s25, 4  ;;  %s34_s26 = int_to_ptr.vmem [resolvable:$true] %s33_s26 }
   0xf   :  { %s433_s27 = scalar_lea.vmem %s34_s26, 1024  ;;  %p438_p6 = scmp.lt.s32.totalorder %s34_s26, %s34_s26 }
  0x10   :  { %p434_p5 = scmp.ne.s32.totalorder %s34_s26, %s433_s27  ;;  %p439_p7 = scmp.lt.s32.totalorder %s433_s27, %s433_s27 }
  0x12   :  { %p440_p8 = por %p439_p7, %p438_p6 }
  0x14   :  { %p441_p9 = pnand %p440_p8, %p434_p5 }
  0x16   :  { %444 = shalt.err (!%p441_p9)
}
  0x17   :  { %39 = dma.hbm_to_vmem [thread:$0]  %s512_s3, 1024, %s34_s26, [#allocation5], %s450_s21, %s450_s21, %s451_s22  }
  0x18   :  { %445 = dma.done.wait [#allocation3], 1024  }
  0x19   :  { %446 = vsyncadd [#allocation3], 4294966272 }
  0x1a   :  { %447 = dma.done.wait [#allocation5], 1024  }
  0x1b   :  { %448 = vsyncadd [#allocation5], 4294966272  ;;  %v453_v0 = vmov 0.0   ;;  %vm454_vm0 = vmmov 0   ;;  %v385_v1 = vld [vmem:[#allocation2 + $0x38] sm:$0xff]   ;;  %v386_v2 = vld [vmem:[#allocation2 + $0x30] sm:$0xff]  }
  0x1c   :  { %339 = vmatprep.subr.bf16.mxu0 %v453_v0  ;;  %355 = vmatprep.mubr.msk.bf16.mxu0 %vm454_vm0, %v453_v0  ;;  %v387_v3 = vld [vmem:[#allocation2 + $0x28] sm:$0xff]   ;;  %v388_v4 = vld [vmem:[#allocation2 + $0x20] sm:$0xff]   ;;  %v389_v5 = vld [vmem:[#allocation2 + $0x18] sm:$0xff]  }
  0x1d   :  { %359 = vmatprep.subr.bf16.mxu1 %v453_v0  ;;  %375 = vmatprep.mubr.msk.bf16.mxu1 %vm454_vm0, %v453_v0  ;;  %v390_v6 = vld [vmem:[#allocation2 + $0x10] sm:$0xff]   ;;  %v391_v7 = vld [vmem:[#allocation2 + $0x8] sm:$0xff]   ;;  %v392_v8 = vld [vmem:[#allocation2] sm:$0xff]  }
  0x1e   :  { %340 = vmatpush3.bf16.msra.mxu0 %v385_v1  ;;  %v49_v9 = vld [vmem:[%s509_s0] sm:$0xff]  ;;  %v50_v10 = vld [vmem:[%s509_s0 + $0x8] sm:$0xff]  ;;  %v393_v12 = vld [vmem:[#allocation4 + $0x38] sm:$0xff]  }
  0x1f   :  { %341 = vmatprep.subr.bf16.mxu0 %v453_v0  ;;  %v51_v11 = vpack.c.bf16 %v50_v10, %v49_v9  ;;  %360 = vmatpush3.bf16.msra.mxu1 %v393_v12  ;;  %v394_v13 = vld [vmem:[#allocation4 + $0x30] sm:$0xff]   ;;  %v395_v14 = vld [vmem:[#allocation4 + $0x28] sm:$0xff]   ;;  %v396_v15 = vld [vmem:[#allocation4 + $0x20] sm:$0xff]  }
  0x20   :  { %361 = vmatprep.subr.bf16.mxu1 %v453_v0  ;;  %v397_v16 = vld [vmem:[#allocation4 + $0x18] sm:$0xff]   ;;  %v398_v17 = vld [vmem:[#allocation4 + $0x10] sm:$0xff]   ;;  %v399_v18 = vld [vmem:[#allocation4 + $0x8] sm:$0xff]  }
  0x21   :  { %v400_v19 = vld [vmem:[#allocation4] sm:$0xff]  }
  0x22   :  { %342 = vmatpush3.bf16.msra.mxu0 %v386_v2  ;;  %v303_v20 = vld [vmem:[%s511_s2] ss:$0 sm:$0xff] }
  0x23   :  { %343 = vmatprep.subr.bf16.mxu0 %v453_v0  ;;  %362 = vmatpush3.bf16.msra.mxu1 %v394_v13  ;;  %v312_v46 = vld [vmem:[%s513_s4] ss:$0 sm:$0xff] }
  0x24   :  { %363 = vmatprep.subr.bf16.mxu1 %v453_v0 }
  0x26   :  { %344 = vmatpush3.bf16.msra.mxu0 %v387_v3 }
  0x27   :  { %345 = vmatprep.subr.bf16.mxu0 %v453_v0  ;;  %364 = vmatpush3.bf16.msra.mxu1 %v395_v14 }
  0x28   :  { %365 = vmatprep.subr.bf16.mxu1 %v453_v0 }
  0x2a   :  { %346 = vmatpush3.bf16.msra.mxu0 %v388_v4 }
  0x2b   :  { %347 = vmatprep.subr.bf16.mxu0 %v453_v0  ;;  %366 = vmatpush3.bf16.msra.mxu1 %v396_v15 }
  0x2c   :  { %367 = vmatprep.subr.bf16.mxu1 %v453_v0 }
  0x2e   :  { %348 = vmatpush3.bf16.msra.mxu0 %v389_v5 }
  0x2f   :  { %349 = vmatprep.subr.bf16.mxu0 %v453_v0  ;;  %368 = vmatpush3.bf16.msra.mxu1 %v397_v16 }
  0x30   :  { %369 = vmatprep.subr.bf16.mxu1 %v453_v0 }
  0x32   :  { %350 = vmatpush3.bf16.msra.mxu0 %v390_v6 }
  0x33   :  { %351 = vmatprep.subr.bf16.mxu0 %v453_v0  ;;  %370 = vmatpush3.bf16.msra.mxu1 %v398_v17 }
  0x34   :  { %371 = vmatprep.subr.bf16.mxu1 %v453_v0 }
  0x36   :  { %352 = vmatpush3.bf16.msra.mxu0 %v391_v7 }
  0x37   :  { %353 = vmatprep.subr.bf16.mxu0 %v453_v0  ;;  %372 = vmatpush3.bf16.msra.mxu1 %v399_v18 }
  0x38   :  { %373 = vmatprep.subr.bf16.mxu1 %v453_v0 }
  0x3a   :  { %354 = vmatpush3.bf16.msra.mxu0 %v392_v8 }
  0x3b   :  { %374 = vmatpush3.bf16.msra.mxu1 %v400_v19 }
  0x3d   :  { %356 = vmatmul.mubr.bf16.vlgmr.msra.gmra.mxu0 %v51_v11 }
  0xfd   :  { %v157_v21 = vpop.f32.mrf.mxu0 }
  0xfe   :  { %v158_v22 = vadd.f32 %v303_v20, %v157_v21 }
  0xff   :  { %v357_v23 = vpop.f32.mrf.mxu0 }
 0x100   :  { %v164_v24 = vmul.f32 %v158_v22, %v158_v22 }
 0x101   :  { %v160_v25 = vpop.f32.mrf.mxu0 }
 0x102   :  { %v166_v26 = vmul.f32 %v164_v24, %v158_v22  ;;  %v161_v27 = vadd.f32 %v303_v20, %v160_v25 }
 0x103   :  { %v358_v28 = vpop.f32.mrf.mxu0 }
 0x104   :  { %v168_v29 = vmul.f32 0.044715, %v166_v26  ;;  %v165_v30 = vmul.f32 %v161_v27, %v161_v27 }
 0x106   :  { %v170_v31 = vadd.f32 %v168_v29, %v158_v22  ;;  %v167_v32 = vmul.f32 %v165_v30, %v161_v27 }
 0x108   :  { %v172_v33 = vmul.f32 0.7978846, %v170_v31  ;;  %v169_v34 = vmul.f32 0.044715, %v167_v32 }
 0x10a   :  { %401 = vtanh.f32 %v172_v33  ;;  %v171_v35 = vadd.f32 %v169_v34, %v161_v27 }
 0x10c   :  { %v173_v36 = vmul.f32 0.7978846, %v171_v35 }
 0x10e   :  { %403 = vtanh.f32 %v173_v36 }
 0x117   :  { %v402_v37 = vpop.eup %401 }
 0x118   :  { %v176_v38 = vadd.f32 1.0, %v402_v37 }
 0x11a   :  { %v178_v41 = vmul.f32 0.5, %v176_v38 }
 0x11b   :  { %v404_v39 = vpop.eup %403 }
 0x11c   :  { %v177_v40 = vadd.f32 1.0, %v404_v39  ;;  %v180_v43 = vmul.f32 %v178_v41, %v158_v22 }
 0x11e   :  { %v179_v42 = vmul.f32 0.5, %v177_v40 }
 0x120   :  { %v181_v44 = vmul.f32 %v179_v42, %v161_v27 }
 0x122   :  { %v182_v45 = vpack.c.bf16 %v181_v44, %v180_v43 }
 0x124   :  { %376 = vmatmul.mubr.bf16.vlgmr.msra.gmra.mxu1 %v182_v45 }
 0x1e4   :  { %v288_v47 = vpop.f32.mrf.mxu1 }
 0x1e5   :  { %v289_v48 = vadd.f32 %v312_v46, %v288_v47 }
 0x1e6   :  { %v377_v49 = vpop.f32.mrf.mxu1 }
 0x1e7   :  { %295 = vst [vmem:[%s514_s5] sm:$0xff] %v289_v48 }
 0x1e8   :  { %v291_v50 = vpop.f32.mrf.mxu1 }
 0x1e9   :  { %v292_v51 = vadd.f32 %v312_v46, %v291_v50 }
 0x1ea   :  { %v378_v52 = vpop.f32.mrf.mxu1 }
 0x1eb   :  { %296 = vst [vmem:[%s514_s5 + $0x8] sm:$0xff] %v292_v51 }
 0x1ec   :  { %301 = vsyncpa [#allocation3], 1 }
 0x1ed   :  { %302 = vsyncpa [#allocation5], 1 }

</bundles_post_ra>
